<compile_context>
chip_gen: v5e
topology: v5e:2x2
jax: 0.10.0
libtpu: 0.0.40
codegen_flags: <defaults>
</compile_context>

<pallas_src>
import jax
import jax.numpy as jnp
from jax.experimental import pallas as pl
from jax.experimental.pallas import tpu as pltpu

VMEM = pl.BlockSpec(memory_space=pltpu.MemorySpace.VMEM)
SMEM = pl.BlockSpec(memory_space=pltpu.MemorySpace.SMEM)


# ---------------------------------------------------------------------------
# Single fused kernel: 5 matmuls, 1 store, no loops.
# ---------------------------------------------------------------------------
def _fused_vae_kernel(scal_ref, hvo_ref, eps_ref, lane_ref,
                      w_in_ref, w_ind_ref, b_in_ref,
                      w_enc_ref, b_enc_ref,
                      w_mulv_ref, b_mulv_ref,
                      w_dec_ref, b_dec_ref,
                      w_head_ref, b_head_ref,
                      out_ref):
    dens = scal_ref[0]          # scalar density shared by every pattern
    thr = scal_ref[1]           # hits threshold
    z_dim = eps_ref.shape[-1]

    # input_layer: concat(hvo, d) @ W == hvo @ W[:F] + d * W[F]  (split-matmul
    # identity), applied to all T positions at once via a block-diagonal weight
    # and a density-fused, T-tiled bias.
    b_in = dens * w_ind_ref[...] + b_in_ref[...]                          # (1, T*D)
    x = jnp.dot(hvo_ref[...], w_in_ref[...],
                preferred_element_type=jnp.float32) + b_in
    x = jnp.maximum(x, 0.0)                                               # (B, T*D)

    # encoder stand-in (per-position Linear, block-diagonal).
    mem = jnp.dot(x, w_enc_ref[...],
                  preferred_element_type=jnp.float32) + b_enc_ref[...]    # (B, T*D)

    # latent: fused [mu | log_var] projection over the flattened (T*D) axis.
    mulv = jnp.dot(mem, w_mulv_ref[...],
                   preferred_element_type=jnp.float32) + b_mulv_ref[...]  # (B, 2Z)
    mu = mulv[:, :z_dim]
    log_var = mulv[:, z_dim:]

    # reparametrize: z = eps * exp(0.5 * log_var) + mu  (never leaves vregs).
    z = eps_ref[...] * jnp.exp(0.5 * log_var) + mu                        # (B, Z)

    # decoder projection to all T positions in one matmul (K = Z fits one pass).
    zd = jnp.dot(z, w_dec_ref[...],
                 preferred_element_type=jnp.float32) + b_dec_ref[...]
    zd = jnp.maximum(zd, 0.0)                                             # (B, T*D)

    # fused [h|v|o] heads for all T positions (block-diagonal head weight).
    logits = jnp.dot(zd, w_head_ref[...],
                     preferred_element_type=jnp.float32) + b_head_ref[...]  # (B, T*3E)

    sig = jax.nn.sigmoid(logits)
    off = jnp.tanh(logits) * 0.5
    hits = jnp.where(sig > thr, 1.0, 0.0)

    lane = lane_ref[...]        # 0 = hit lane, 1 = velocity lane, 2 = offset lane
    out_ref[...] = jnp.where(lane == 0, hits, jnp.where(lane == 1, sig, off))


# ---------------------------------------------------------------------------
# Parameter init (deterministic, synthetic) + one-time kernel-friendly packing.
# ---------------------------------------------------------------------------
def init_params(key, *, feat_in, d_model, seq_len, latent_dim, n_voices):
    def dense(k, fan_in, fan_out):
        kw, kb = jax.random.split(k)
        scale = 1.0 / jnp.sqrt(jnp.float32(fan_in))
        w = jax.random.uniform(kw, (fan_in, fan_out), jnp.float32, -scale, scale)
        b = jax.random.uniform(kb, (1, fan_out), jnp.float32, -scale, scale)
        return w, b

    ks = jax.random.split(key, 7)
    w_in_full, b_in = dense(ks[0], feat_in + 1, d_model)        # input_layer
    w_enc, b_enc = dense(ks[1], d_model, d_model)               # encoder stand-in
    w_mu, b_mu = dense(ks[2], seq_len * d_model, latent_dim)    # latent mu
    w_lv, b_lv = dense(ks[3], seq_len * d_model, latent_dim)    # latent log_var
    w_dec, b_dec = dense(ks[4], latent_dim, seq_len * d_model)  # decoder proj
    w_h, b_h = dense(ks[5], d_model, n_voices)                  # hits head
    kv, ko = jax.random.split(ks[6])
    w_v, b_v = dense(kv, d_model, n_voices)                     # velocity head
    w_o, b_o = dense(ko, d_model, n_voices)                     # offset head

    eye_t = jnp.eye(seq_len, dtype=jnp.float32)
    w_head = jnp.concatenate([w_h, w_v, w_o], axis=1)           # (D, 3E) fused heads
    b_head = jnp.concatenate([b_h, b_v, b_o], axis=1)           # (1, 3E)

    return {
        # per-position Linears packed block-diagonally (T copies on the diagonal)
        "w_in_bd":   jnp.kron(eye_t, w_in_full[:feat_in, :]),           # (T*F, T*D)
        "w_ind_t":   jnp.tile(w_in_full[feat_in:feat_in + 1, :], (1, seq_len)),  # (1, T*D)
        "b_in_t":    jnp.tile(b_in, (1, seq_len)),                      # (1, T*D)
        "w_enc_bd":  jnp.kron(eye_t, w_enc),                            # (T*D, T*D)
        "b_enc_t":   jnp.tile(b_enc, (1, seq_len)),                     # (1, T*D)
        # fused mu / log_var projection
        "w_mulv":    jnp.concatenate([w_mu, w_lv], axis=1),             # (T*D, 2Z)
        "b_mulv":    jnp.concatenate([b_mu, b_lv], axis=1),             # (1, 2Z)
        # decoder projection keeps its natural (Z, T*D) layout
        "w_dec":     w_dec,                                             # (Z, T*D)
        "b_dec":     b_dec,                                             # (1, T*D)
        # fused [h|v|o] heads, block-diagonal over T positions
        "w_head_bd": jnp.kron(eye_t, w_head),                           # (T*D, T*3E)
        "b_head_t":  jnp.tile(b_head, (1, seq_len)),                    # (1, T*3E)
    }


# ---------------------------------------------------------------------------
# Forward (mirrors full_2D_model.forward)
# ---------------------------------------------------------------------------
@jax.jit
def full_2d_forward(params, hvo, density, threshold, eps):
    B, T, F = hvo.shape
    te3 = params["w_head_bd"].shape[1]          # T * 3E
    e3 = te3 // T                               # 3E (per-timestep output width)

    # densities = density.repeat(num_patterns): a single scalar density shared
    # by every pattern (matches the reference for a length-1 density tensor).
    dens = jnp.reshape(density, (-1,))[0].astype(jnp.float32)
    thr = jnp.asarray(threshold, jnp.float32)
    scalars = jnp.stack([dens, thr])            # (2,) -> one 1-D SMEM operand

    # Contiguous reshape only; no transposes anywhere in the data path.
    hvo_flat = hvo.astype(jnp.float32).reshape(B, T * F)

    # Lane classifier for the fused output: 0=hit, 1=velocity, 2=offset.
    # Constant under jit (shapes are static).
    lane_kind = jnp.broadcast_to(
        jnp.tile(jnp.arange(e3, dtype=jnp.int32) // (e3 // 3), (T,))[None, :],
        (B, te3))

    out = pl.pallas_call(
        _fused_vae_kernel,
        out_shape=jax.ShapeDtypeStruct((B, te3), jnp.float32),
        in_specs=[SMEM] + [VMEM] * 14,
        out_specs=VMEM,
        # TODO(synk): when B grows to a few hundred patterns, add a row grid with
        # dimension_semantics=("parallel",) so the second TensorCore on v7x is used.
    )(scalars, hvo_flat, eps.astype(jnp.float32), lane_kind,
      params["w_in_bd"], params["w_ind_t"], params["b_in_t"],
      params["w_enc_bd"], params["b_enc_t"],
      params["w_mulv"], params["b_mulv"],
      params["w_dec"], params["b_dec"],
      params["w_head_bd"], params["b_head_t"])

    return out.reshape(B, T, e3)                # contiguous reshape, no transpose


# ---------------------------------------------------------------------------
if __name__ == "__main__":
    # Small shapes: B=2 patterns, T=8 time-steps, E=4 voices -> hvo feature dim 12.
    B, T, E = 2, 8, 4
    F = 3 * E
    D_MODEL, Z_DIM = 32, 16

    root = jax.random.PRNGKey(0)
    k_param, k_hvo, k_eps = jax.random.split(root, 3)

    params = init_params(k_param, feat_in=F, d_model=D_MODEL, seq_len=T,
                         latent_dim=Z_DIM, n_voices=E)

    hvo = jax.random.uniform(k_hvo, (B, T, F), dtype=jnp.float32)
    density = jnp.array([0.6], dtype=jnp.float32)
    threshold = jnp.array(0.5, dtype=jnp.float32)
    # eps = torch.randn_like(std) -- generated deterministically here and passed in.
    eps = jax.random.normal(k_eps, (B, Z_DIM), dtype=jnp.float32)

    out = full_2d_forward(params, hvo, density, threshold, eps)
    out = jax.block_until_ready(out)

    assert out.shape == (B, T, 3 * E), out.shape
    assert out.dtype == jnp.float32
    print("KERNEL_OK")
</pallas_src>

<mosaic_0001>
module attributes {stable_mosaic.version = 11 : i64} {
  func.func @_fused_vae_kernel(%arg0: memref<2xf32, #tpu.memory_space<smem>>, %arg1: memref<2x96xf32, #tpu.memory_space<vmem>>, %arg2: memref<2x16xf32, #tpu.memory_space<vmem>>, %arg3: memref<2x96xi32, #tpu.memory_space<vmem>>, %arg4: memref<96x256xf32, #tpu.memory_space<vmem>>, %arg5: memref<1x256xf32, #tpu.memory_space<vmem>>, %arg6: memref<1x256xf32, #tpu.memory_space<vmem>>, %arg7: memref<256x256xf32, #tpu.memory_space<vmem>>, %arg8: memref<1x256xf32, #tpu.memory_space<vmem>>, %arg9: memref<256x32xf32, #tpu.memory_space<vmem>>, %arg10: memref<1x32xf32, #tpu.memory_space<vmem>>, %arg11: memref<16x256xf32, #tpu.memory_space<vmem>>, %arg12: memref<1x256xf32, #tpu.memory_space<vmem>>, %arg13: memref<256x96xf32, #tpu.memory_space<vmem>>, %arg14: memref<1x96xf32, #tpu.memory_space<vmem>>, %arg15: memref<2x96xf32, #tpu.memory_space<vmem>>) attributes {dimension_semantics = [], scalar_prefetch = 0 : i64, scratch_operands = 0 : i64, tpu.core_type = #tpu.core_type<tc>} {
    %c0 = arith.constant 0 : index
    %0 = memref.load %arg0[%c0] : memref<2xf32, #tpu.memory_space<smem>>
    %c1 = arith.constant 1 : index
    %1 = memref.load %arg0[%c1] : memref<2xf32, #tpu.memory_space<smem>>
    %c0_0 = arith.constant 0 : index
    %c0_1 = arith.constant 0 : index
    %2 = vector.load %arg5[%c0_0, %c0_1] : memref<1x256xf32, #tpu.memory_space<vmem>>, vector<1x256xf32>
    %3 = vector.broadcast %0 : f32 to vector<1x256xf32>
    %4 = arith.mulf %3, %2 : vector<1x256xf32>
    %c0_2 = arith.constant 0 : index
    %c0_3 = arith.constant 0 : index
    %5 = vector.load %arg6[%c0_2, %c0_3] : memref<1x256xf32, #tpu.memory_space<vmem>>, vector<1x256xf32>
    %6 = arith.addf %4, %5 : vector<1x256xf32>
    %c0_4 = arith.constant 0 : index
    %c0_5 = arith.constant 0 : index
    %7 = vector.load %arg1[%c0_4, %c0_5] : memref<2x96xf32, #tpu.memory_space<vmem>>, vector<2x96xf32>
    %c0_6 = arith.constant 0 : index
    %c0_7 = arith.constant 0 : index
    %8 = vector.load %arg4[%c0_6, %c0_7] : memref<96x256xf32, #tpu.memory_space<vmem>>, vector<96x256xf32>
    %cst = arith.constant dense<0.000000e+00> : vector<2x256xf32>
    %9 = tpu.matmul %7, %8, %cst {dimension_numbers = #tpu.dot_dimension_numbers<[1], [0], [0], [1], [0, 0, 1, 1], [], []>} : vector<2x96xf32>, vector<96x256xf32>, vector<2x256xf32> -> vector<2x256xf32>
    %10 = vector.broadcast %6 : vector<1x256xf32> to vector<2x256xf32>
    %11 = arith.addf %9, %10 : vector<2x256xf32>
    %cst_8 = arith.constant 0.000000e+00 : f32
    %12 = vector.broadcast %cst_8 : f32 to vector<2x256xf32>
    %13 = arith.maximumf %11, %12 : vector<2x256xf32>
    %c0_9 = arith.constant 0 : index
    %c0_10 = arith.constant 0 : index
    %14 = vector.load %arg7[%c0_9, %c0_10] : memref<256x256xf32, #tpu.memory_space<vmem>>, vector<256x256xf32>
    %cst_11 = arith.constant dense<0.000000e+00> : vector<2x256xf32>
    %15 = tpu.matmul %13, %14, %cst_11 {dimension_numbers = #tpu.dot_dimension_numbers<[1], [0], [0], [1], [0, 0, 1, 1], [], []>} : vector<2x256xf32>, vector<256x256xf32>, vector<2x256xf32> -> vector<2x256xf32>
    %c0_12 = arith.constant 0 : index
    %c0_13 = arith.constant 0 : index
    %16 = vector.load %arg8[%c0_12, %c0_13] : memref<1x256xf32, #tpu.memory_space<vmem>>, vector<1x256xf32>
    %17 = vector.broadcast %16 : vector<1x256xf32> to vector<2x256xf32>
    %18 = arith.addf %15, %17 : vector<2x256xf32>
    %c0_14 = arith.constant 0 : index
    %c0_15 = arith.constant 0 : index
    %19 = vector.load %arg9[%c0_14, %c0_15] : memref<256x32xf32, #tpu.memory_space<vmem>>, vector<256x32xf32>
    %cst_16 = arith.constant dense<0.000000e+00> : vector<2x32xf32>
    %20 = tpu.matmul %18, %19, %cst_16 {dimension_numbers = #tpu.dot_dimension_numbers<[1], [0], [0], [1], [0, 0, 1, 1], [], []>} : vector<2x256xf32>, vector<256x32xf32>, vector<2x32xf32> -> vector<2x32xf32>
    %c0_17 = arith.constant 0 : index
    %c0_18 = arith.constant 0 : index
    %21 = vector.load %arg10[%c0_17, %c0_18] : memref<1x32xf32, #tpu.memory_space<vmem>>, vector<1x32xf32>
    %22 = vector.broadcast %21 : vector<1x32xf32> to vector<2x32xf32>
    %23 = arith.addf %20, %22 : vector<2x32xf32>
    %24 = vector.extract_strided_slice %23 {offsets = [0, 0], sizes = [2, 16], strides = [1, 1]} : vector<2x32xf32> to vector<2x16xf32>
    %25 = vector.extract_strided_slice %23 {offsets = [0, 16], sizes = [2, 16], strides = [1, 1]} : vector<2x32xf32> to vector<2x16xf32>
    %c0_19 = arith.constant 0 : index
    %c0_20 = arith.constant 0 : index
    %26 = vector.load %arg2[%c0_19, %c0_20] : memref<2x16xf32, #tpu.memory_space<vmem>>, vector<2x16xf32>
    %cst_21 = arith.constant 5.000000e-01 : f32
    %27 = vector.broadcast %cst_21 : f32 to vector<2x16xf32>
    %28 = arith.mulf %27, %25 : vector<2x16xf32>
    %29 = math.exp %28 : vector<2x16xf32>
    %30 = arith.mulf %26, %29 : vector<2x16xf32>
    %31 = arith.addf %30, %24 : vector<2x16xf32>
    %c0_22 = arith.constant 0 : index
    %c0_23 = arith.constant 0 : index
    %32 = vector.load %arg11[%c0_22, %c0_23] : memref<16x256xf32, #tpu.memory_space<vmem>>, vector<16x256xf32>
    %cst_24 = arith.constant dense<0.000000e+00> : vector<2x256xf32>
    %33 = tpu.matmul %31, %32, %cst_24 {dimension_numbers = #tpu.dot_dimension_numbers<[1], [0], [0], [1], [0, 0, 1, 1], [], []>} : vector<2x16xf32>, vector<16x256xf32>, vector<2x256xf32> -> vector<2x256xf32>
    %c0_25 = arith.constant 0 : index
    %c0_26 = arith.constant 0 : index
    %34 = vector.load %arg12[%c0_25, %c0_26] : memref<1x256xf32, #tpu.memory_space<vmem>>, vector<1x256xf32>
    %35 = vector.broadcast %34 : vector<1x256xf32> to vector<2x256xf32>
    %36 = arith.addf %33, %35 : vector<2x256xf32>
    %cst_27 = arith.constant 0.000000e+00 : f32
    %37 = vector.broadcast %cst_27 : f32 to vector<2x256xf32>
    %38 = arith.maximumf %36, %37 : vector<2x256xf32>
    %c0_28 = arith.constant 0 : index
    %c0_29 = arith.constant 0 : index
    %39 = vector.load %arg13[%c0_28, %c0_29] : memref<256x96xf32, #tpu.memory_space<vmem>>, vector<256x96xf32>
    %cst_30 = arith.constant dense<0.000000e+00> : vector<2x96xf32>
    %40 = tpu.matmul %38, %39, %cst_30 {dimension_numbers = #tpu.dot_dimension_numbers<[1], [0], [0], [1], [0, 0, 1, 1], [], []>} : vector<2x256xf32>, vector<256x96xf32>, vector<2x96xf32> -> vector<2x96xf32>
    %c0_31 = arith.constant 0 : index
    %c0_32 = arith.constant 0 : index
    %41 = vector.load %arg14[%c0_31, %c0_32] : memref<1x96xf32, #tpu.memory_space<vmem>>, vector<1x96xf32>
    %42 = vector.broadcast %41 : vector<1x96xf32> to vector<2x96xf32>
    %43 = arith.addf %40, %42 : vector<2x96xf32>
    %44 = arith.negf %43 : vector<2x96xf32>
    %45 = math.exp %44 : vector<2x96xf32>
    %cst_33 = arith.constant 1.000000e+00 : f32
    %46 = vector.broadcast %cst_33 : f32 to vector<2x96xf32>
    %47 = arith.addf %46, %45 : vector<2x96xf32>
    %48 = arith.divf %46, %47 : vector<2x96xf32>
    %49 = math.tanh %43 : vector<2x96xf32>
    %cst_34 = arith.constant 5.000000e-01 : f32
    %50 = vector.broadcast %cst_34 : f32 to vector<2x96xf32>
    %51 = arith.mulf %49, %50 : vector<2x96xf32>
    %52 = vector.broadcast %1 : f32 to vector<2x96xf32>
    %53 = arith.cmpf ogt, %48, %52 : vector<2x96xf32>
    %cst_35 = arith.constant 1.000000e+00 : f32
    %cst_36 = arith.constant 0.000000e+00 : f32
    %54 = vector.broadcast %cst_35 : f32 to vector<2x96xf32>
    %55 = vector.broadcast %cst_36 : f32 to vector<2x96xf32>
    %56 = arith.select %53, %54, %55 : vector<2x96xi1>, vector<2x96xf32>
    %c0_37 = arith.constant 0 : index
    %c0_38 = arith.constant 0 : index
    %57 = vector.load %arg3[%c0_37, %c0_38] : memref<2x96xi32, #tpu.memory_space<vmem>>, vector<2x96xi32>
    %c0_i32 = arith.constant 0 : i32
    %58 = vector.broadcast %c0_i32 : i32 to vector<2x96xi32>
    %59 = arith.cmpi eq, %57, %58 : vector<2x96xi32>
    %c1_i32 = arith.constant 1 : i32
    %60 = vector.broadcast %c1_i32 : i32 to vector<2x96xi32>
    %61 = arith.cmpi eq, %57, %60 : vector<2x96xi32>
    %62 = arith.select %61, %48, %51 : vector<2x96xi1>, vector<2x96xf32>
    %63 = arith.select %59, %56, %62 : vector<2x96xi1>, vector<2x96xf32>
    %c0_39 = arith.constant 0 : index
    %c0_40 = arith.constant 0 : index
    %64 = vector.load %arg15[%c0_39, %c0_40] : memref<2x96xf32, #tpu.memory_space<vmem>>, vector<2x96xf32>
    tpu.vector_store %arg15[%c0_39, %c0_40], %63 {strides = array<i32>} : memref<2x96xf32, #tpu.memory_space<vmem>>, vector<2x96xf32>,
    return
  }
}

</mosaic_0001>

<bundles_post_ra>
// kernel: tile.8
= control target key start
LH: loop header
LB: loop body
LE: loop exit
PB: predicated region body
PF: predicated region fallthrough
CT: control target
= control target key end

     0   :  { %s22_s0 = inlined_call_operand.vmem [shape: s32[12], index: 0, kind: input, shape index: {}]   ;;  %s23_s1 = inlined_call_operand.vmem [shape: s32[8,12], index: 1, kind: output, shape index: {}]  }
   0x1   :  { %v4_v0 = vld [vmem:[%s22_s0] ss:$0 sm:$0xff] }
   0x2   :  { %5 = vst [vmem:[%s23_s1] sm:$0xff] %v4_v0 }

// kernel: full_2d_forward.1
= control target key start
LH: loop header
LB: loop body
LE: loop exit
PB: predicated region body
PF: predicated region fallthrough
CT: control target
= control target key end

     0   :  { %20 = vsyncpa [#allocation4], 0  ;;  %s1257_s0 = inlined_call_operand.vmem [shape: f32[2], index: 0, kind: input, shape index: {}]   ;;  %s1258_s1 = inlined_call_operand.vmem [shape: f32[2,96], index: 1, kind: input, shape index: {}]   ;;  %s1259_s2 = inlined_call_operand.vmem [shape: f32[2,16], index: 2, kind: input, shape index: {}]   ;;  %s1260_s3 = inlined_call_operand.vmem [shape: s32[2,96], index: 3, kind: input, shape index: {}]   ;;  %s1261_s4 = inlined_call_operand.vmem [shape: f32[96,256], index: 4, kind: input, shape index: {}]   ;;  %s1262_s5 = inlined_call_operand.vmem [shape: f32[1,256], index: 5, kind: input, shape index: {}]   ;;  %s1263_s6 = inlined_call_operand.vmem [shape: f32[1,256], index: 6, kind: input, shape index: {}]   ;;  %s1264_s7 = inlined_call_operand.vmem [shape: f32[256,256], index: 7, kind: input, shape index: {}]   ;;  %s1265_s8 = inlined_call_operand.vmem [shape: f32[1,256], index: 8, kind: input, shape index: {}]   ;;  %s1266_s9 = inlined_call_operand.vmem [shape: f32[256,32], index: 9, kind: input, shape index: {}]   ;;  %s1267_s10 = inlined_call_operand.hbm [shape: f32[1,32], index: 10, kind: input, shape index: {}]   ;;  %s1268_s11 = inlined_call_operand.vmem [shape: f32[16,256], index: 11, kind: input, shape index: {}]   ;;  %s1269_s12 = inlined_call_operand.vmem [shape: f32[1,256], index: 12, kind: input, shape index: {}]   ;;  %s1270_s13 = inlined_call_operand.vmem [shape: f32[256,96], index: 13, kind: input, shape index: {}]   ;;  %s1271_s14 = inlined_call_operand.hbm [shape: f32[1,96], index: 14, kind: input, shape index: {}]   ;;  %s1272_s15 = inlined_call_operand.vmem [shape: f32[2,96], index: 15, kind: output, shape index: {}]  }
   0x1   :  { %21 = vsyncpa [#allocation3], 0  ;;  %s28_s20 = sshll.u32 %s1257_s0, 4  ;;  %s29_s20 = int_to_ptr.vmem [resolvable:$true] %s28_s20 }
   0x2   :  { %22 = vsyncpa [#allocation7], 0  ;;  %s55_s23 = sshll.u32 %s1267_s10, 4  ;;  %s667_s24 = smov [#allocation2]   ;;  %s56_s23 = int_to_ptr.hbm [resolvable:$true] %s55_s23 }
   0x3   :  { %31 = dma.vmem_to_smem %s29_s20, 16, %s667_s24, [#allocation4]  }
   0x4   :  { %s668_s25 = smov [#allocation5]   ;;  %s72_s29 = sshll.u32 %s1271_s14, 4  ;;  %s73_s29 = int_to_ptr.hbm [resolvable:$true] %s72_s29 }
   0x5   :  { %s57_s26 = sshll.u32 %s668_s25, 4  ;;  %s669_s30 = smov [#allocation6]   ;;  %s58_s26 = int_to_ptr.vmem [resolvable:$true] %s57_s26 }
   0x6   :  { %60 = dma.hbm_to_vmem [thread:$0]  %s56_s23, 16, %s58_s26, [#allocation3]  }
   0x7   :  { %s74_s0 = sshll.u32 %s669_s30, 4  ;;  %s75_s0 = int_to_ptr.vmem [resolvable:$true] %s74_s0 }
   0x8   :  { %77 = dma.hbm_to_vmem [thread:$0]  %s73_s29, 16, %s75_s0, [#allocation7]  }
   0x9   :  { %661 = dma.done.wait [#allocation4], 16  }
   0xa   :  { %662 = vsyncadd [#allocation4], 4294967280 }
   0xb   :  { %663 = dma.done.wait [#allocation3], 16  }
   0xc   :  { %664 = vsyncadd [#allocation3], 4294967280 }
   0xd   :  { %665 = dma.done.wait [#allocation7], 16  }
   0xe   :  { %666 = vsyncadd [#allocation7], 4294967280 }
   0xf   :  { %90 = sfence }
  0x10   :  { %v121_v0 = vld [vmem:[%s1261_s4 + $0xb0] sm:$0xff]  ;;  %v119_v1 = vld [vmem:[%s1261_s4 + $0xa0] sm:$0xff]  ;;  %v122_v2 = vld [vmem:[%s1261_s4 + $0xb8] sm:$0xff]  ;;  %vm128_vm0 = vcmask 785408   ;;  %s91_s29 = sld [smem:[#allocation2]]  ;;  %vm420_vm1 = vcmask 130048  }
  0x11   :  { %136 = vmatpush.msra.mxu2 %v121_v0  ;;  %156 = vmatpush.msra.mxu3 %v122_v2  ;;  %v120_v3 = vld [vmem:[%s1261_s4 + $0xa8] sm:$0xff]  ;;  %v117_v4 = vld [vmem:[%s1261_s4 + $0x90] sm:$0xff]  ;;  %v118_v5 = vld [vmem:[%s1261_s4 + $0x98] sm:$0xff]  ;;  %vm571_vm9 = vcmask 779264  }
  0x12   :  { %v115_v6 = vld [vmem:[%s1261_s4 + $0x80] sm:$0xff]  ;;  %v116_v7 = vld [vmem:[%s1261_s4 + $0x88] sm:$0xff]  ;;  %v113_v8 = vld [vmem:[%s1261_s4 + $0x70] sm:$0xff] }
  0x13   :  { %137 = vmatpush.msra.mxu2 %v119_v1  ;;  %157 = vmatpush.msra.mxu3 %v120_v3  ;;  %v114_v9 = vld [vmem:[%s1261_s4 + $0x78] sm:$0xff]  ;;  %v111_v10 = vld [vmem:[%s1261_s4 + $0x60] sm:$0xff]  ;;  %v112_v11 = vld [vmem:[%s1261_s4 + $0x68] sm:$0xff] }
  0x14   :  { %v205_v12 = vld [vmem:[%s1264_s7 + $0xf8] sm:$0xff]  ;;  %v203_v13 = vld [vmem:[%s1264_s7 + $0xe8] sm:$0xff]  ;;  %v109_v14 = vld [vmem:[%s1261_s4 + $0x50] sm:$0xff] }
  0x15   :  { %138 = vmatpush.msra.mxu2 %v117_v4  ;;  %158 = vmatpush.msra.mxu3 %v118_v5  ;;  %v110_v15 = vld [vmem:[%s1261_s4 + $0x58] sm:$0xff]  ;;  %v235_v18 = vld [vmem:[%s1264_s7 + $0x1e8] sm:$0xff]  ;;  %v107_v19 = vld [vmem:[%s1261_s4 + $0x40] sm:$0xff] }
  0x16   :  { %284 = vmatpush.msra.mxu0 %v205_v12  ;;  %v237_v16 = vld [vmem:[%s1264_s7 + $0x1f8] sm:$0xff]  ;;  %v108_v20 = vld [vmem:[%s1261_s4 + $0x48] sm:$0xff]  ;;  %v105_v23 = vld [vmem:[%s1261_s4 + $0x30] sm:$0xff] }
  0x17   :  { %139 = vmatpush.msra.mxu2 %v115_v6  ;;  %159 = vmatpush.msra.mxu3 %v116_v7  ;;  %v201_v17 = vld [vmem:[%s1264_s7 + $0xd8] sm:$0xff]  ;;  %v199_v21 = vld [vmem:[%s1264_s7 + $0xc8] sm:$0xff]  ;;  %v103_v27 = vld [vmem:[%s1261_s4 + $0x20] sm:$0xff] }
  0x18   :  { %285 = vmatpush.msra.mxu0 %v203_v13  ;;  %304 = vmatpush.msra.mxu1 %v237_v16  ;;  %v233_v22 = vld [vmem:[%s1264_s7 + $0x1d8] sm:$0xff]  ;;  %v231_v26 = vld [vmem:[%s1264_s7 + $0x1c8] sm:$0xff]  ;;  %v101_v31 = vld [vmem:[%s1261_s4 + $0x10] sm:$0xff] }
  0x19   :  { %140 = vmatpush.msra.mxu2 %v113_v8  ;;  %160 = vmatpush.msra.mxu3 %v114_v9  ;;  %v106_v24 = vld [vmem:[%s1261_s4 + $0x38] sm:$0xff]  ;;  %v104_v28 = vld [vmem:[%s1261_s4 + $0x28] sm:$0xff]  ;;  %v99_v35 = vld [vmem:[%s1261_s4] sm:$0xff] }
  0x1a   :  { %286 = vmatpush.msra.mxu0 %v201_v17  ;;  %305 = vmatpush.msra.mxu1 %v235_v18  ;;  %v197_v25 = vld [vmem:[%s1264_s7 + $0xb8] sm:$0xff]  ;;  %v195_v29 = vld [vmem:[%s1264_s7 + $0xa8] sm:$0xff]  ;;  %v98_v37 = vld [vmem:[%s1258_s1] sm:$0x3] }
  0x1b   :  { %141 = vmatpush.msra.mxu2 %v111_v10  ;;  %161 = vmatpush.msra.mxu3 %v112_v11  ;;  %v229_v30 = vld [vmem:[%s1264_s7 + $0x1b8] sm:$0xff]  ;;  %v227_v34 = vld [vmem:[%s1264_s7 + $0x1a8] sm:$0xff]  ;;  %v204_v38 = vld [vmem:[%s1264_s7 + $0xf0] sm:$0xff] }
  0x1c   :  { %287 = vmatpush.msra.mxu0 %v199_v21  ;;  %306 = vmatpush.msra.mxu1 %v233_v22  ;;  %v102_v32 = vld [vmem:[%s1261_s4 + $0x18] sm:$0xff]  ;;  %v100_v36 = vld [vmem:[%s1261_s4 + $0x8] sm:$0xff]  ;;  %v236_v39 = vld [vmem:[%s1264_s7 + $0x1f0] sm:$0xff] }
  0x1d   :  { %142 = vmatpush.msra.mxu2 %v109_v14  ;;  %162 = vmatpush.msra.mxu3 %v110_v15  ;;  %v193_v33 = vld [vmem:[%s1264_s7 + $0x98] sm:$0xff]  ;;  %v191_v40 = vld [vmem:[%s1264_s7 + $0x88] sm:$0xff]  ;;  %v202_v42 = vld [vmem:[%s1264_s7 + $0xe0] sm:$0xff] }
  0x1e   :  { %288 = vmatpush.msra.mxu0 %v197_v25  ;;  %307 = vmatpush.msra.mxu1 %v231_v26  ;;  %v225_v41 = vld [vmem:[%s1264_s7 + $0x198] sm:$0xff]  ;;  %v234_v43 = vld [vmem:[%s1264_s7 + $0x1e0] sm:$0xff]  ;;  %v223_v45 = vld [vmem:[%s1264_s7 + $0x188] sm:$0xff] }
  0x1f   :  { %143 = vmatpush.msra.mxu2 %v107_v19  ;;  %163 = vmatpush.msra.mxu3 %v108_v20  ;;  %v189_v44 = vld [vmem:[%s1264_s7 + $0x78] sm:$0xff]  ;;  %v200_v46 = vld [vmem:[%s1264_s7 + $0xd0] sm:$0xff]  ;;  %v187_v48 = vld [vmem:[%s1264_s7 + $0x68] sm:$0xff] }
  0x20   :  { %289 = vmatpush.msra.mxu0 %v195_v29  ;;  %308 = vmatpush.msra.mxu1 %v229_v30  ;;  %v232_v47 = vld [vmem:[%s1264_s7 + $0x1d0] sm:$0xff]  ;;  %v221_v49 = vld [vmem:[%s1264_s7 + $0x178] sm:$0xff]  ;;  %v198_v50 = vld [vmem:[%s1264_s7 + $0xc0] sm:$0xff] }
  0x21   :  { %144 = vmatpush.msra.mxu2 %v105_v23  ;;  %164 = vmatpush.msra.mxu3 %v106_v24  ;;  %v230_v51 = vld [vmem:[%s1264_s7 + $0x1c0] sm:$0xff]  ;;  %v185_v52 = vld [vmem:[%s1264_s7 + $0x58] sm:$0xff]  ;;  %v219_v53 = vld [vmem:[%s1264_s7 + $0x168] sm:$0xff] }
  0x22   :  { %290 = vmatpush.msra.mxu0 %v193_v33  ;;  %309 = vmatpush.msra.mxu1 %v227_v34  ;;  %v196_v54 = vld [vmem:[%s1264_s7 + $0xb0] sm:$0xff]  ;;  %v183_v56 = vld [vmem:[%s1264_s7 + $0x48] sm:$0xff]  ;;  %v217_v57 = vld [vmem:[%s1264_s7 + $0x158] sm:$0xff] }
  0x23   :  { %145 = vmatpush.msra.mxu2 %v103_v27  ;;  %165 = vmatpush.msra.mxu3 %v104_v28  ;;  %v228_v55 = vld [vmem:[%s1264_s7 + $0x1b0] sm:$0xff]  ;;  %v194_v58 = vld [vmem:[%s1264_s7 + $0xa0] sm:$0xff]  ;;  %v181_v60 = vld [vmem:[%s1264_s7 + $0x38] sm:$0xff] }
  0x24   :  { %291 = vmatpush.msra.mxu0 %v191_v40  ;;  %310 = vmatpush.msra.mxu1 %v225_v41  ;;  %v226_v59 = vld [vmem:[%s1264_s7 + $0x1a0] sm:$0xff]  ;;  %v215_v61 = vld [vmem:[%s1264_s7 + $0x148] sm:$0xff]  ;;  %v192_v62 = vld [vmem:[%s1264_s7 + $0x90] sm:$0xff]  ;;  %v94_v40 = vstv %s91_s29 }
  0x25   :  { %146 = vmatpush.msra.mxu2 %v101_v31  ;;  %166 = vmatpush.msra.mxu3 %v102_v32  ;;  %v224_v63 = vld [vmem:[%s1264_s7 + $0x190] sm:$0xff]  ;;  %v190_v0 = vld [vmem:[%s1264_s7 + $0x80] sm:$0xff]  ;;  %v179_v13 = vld [vmem:[%s1264_s7 + $0x28] sm:$0xff] }
  0x26   :  { %292 = vmatpush.msra.mxu0 %v189_v44  ;;  %311 = vmatpush.msra.mxu1 %v223_v45  ;;  %v222_v1 = vld [vmem:[%s1264_s7 + $0x180] sm:$0xff]  ;;  %v188_v2 = vld [vmem:[%s1264_s7 + $0x70] sm:$0xff]  ;;  %v213_v14 = vld [vmem:[%s1264_s7 + $0x138] sm:$0xff] }
  0x27   :  { %147 = vmatpush.msra.mxu2 %v99_v35  ;;  %167 = vmatpush.msra.mxu3 %v100_v36  ;;  %v220_v3 = vld [vmem:[%s1264_s7 + $0x170] sm:$0xff]  ;;  %v186_v4 = vld [vmem:[%s1264_s7 + $0x60] sm:$0xff]  ;;  %v177_v17 = vld [vmem:[%s1264_s7 + $0x18] sm:$0xff] }
  0x28   :  { %581 = vmatmul.msk.f32.vlgmr.msra.gmra.mxu2 %vm128_vm0, %v98_v37  ;;  %582 = vmatmul.msk.f32.vlgmr.msra.gmra.mxu3 %vm128_vm0, %v98_v37  ;;  %v218_v5 = vld [vmem:[%s1264_s7 + $0x160] sm:$0xff]  ;;  %v184_v6 = vld [vmem:[%s1264_s7 + $0x50] sm:$0xff]  ;;  %v211_v18 = vld [vmem:[%s1264_s7 + $0x128] sm:$0xff] }
  0x29   :  { %244 = vmatpush.msrb.mxu2 %v204_v38  ;;  %264 = vmatpush.msrb.mxu3 %v236_v39  ;;  %v216_v7 = vld [vmem:[%s1264_s7 + $0x150] sm:$0xff]  ;;  %v182_v8 = vld [vmem:[%s1264_s7 + $0x40] sm:$0xff]  ;;  %v175_v21 = vld [vmem:[%s1264_s7 + $0x8] sm:$0xff] }
  0x2a   :  { %293 = vmatpush.msra.mxu0 %v187_v48  ;;  %312 = vmatpush.msra.mxu1 %v221_v49  ;;  %v214_v9 = vld [vmem:[%s1264_s7 + $0x140] sm:$0xff]  ;;  %v180_v10 = vld [vmem:[%s1264_s7 + $0x30] sm:$0xff]  ;;  %v209_v22 = vld [vmem:[%s1264_s7 + $0x118] sm:$0xff] }
  0x2b   :  { %245 = vmatpush.msrb.mxu2 %v202_v42  ;;  %265 = vmatpush.msrb.mxu3 %v234_v43  ;;  %v178_v11 = vld [vmem:[%s1264_s7 + $0x20] sm:$0xff]  ;;  %v212_v12 = vld [vmem:[%s1264_s7 + $0x130] sm:$0xff]  ;;  %v207_v24 = vld [vmem:[%s1264_s7 + $0x108] sm:$0xff] }
  0x2c   :  { %294 = vmatpush.msra.mxu0 %v185_v52  ;;  %313 = vmatpush.msra.mxu1 %v219_v53  ;;  %v176_v15 = vld [vmem:[%s1264_s7 + $0x10] sm:$0xff]  ;;  %v210_v16 = vld [vmem:[%s1264_s7 + $0x120] sm:$0xff]  ;;  %v355_v25 = vld [vmem:[%s1266_s9 + $0xf8] sm:$0xff] }
  0x2d   :  { %246 = vmatpush.msrb.mxu2 %v200_v46  ;;  %266 = vmatpush.msrb.mxu3 %v232_v47  ;;  %v174_v19 = vld [vmem:[%s1264_s7] sm:$0xff]  ;;  %v208_v20 = vld [vmem:[%s1264_s7 + $0x110] sm:$0xff]  ;;  %v339_v27 = vld [vmem:[%s1266_s9 + $0x78] sm:$0xff] }
  0x2e   :  { %295 = vmatpush.msra.mxu0 %v183_v56  ;;  %314 = vmatpush.msra.mxu1 %v217_v57  ;;  %v206_v23 = vld [vmem:[%s1264_s7 + $0x100] sm:$0xff]  ;;  %v354_v26 = vld [vmem:[%s1266_s9 + $0xf0] sm:$0xff]  ;;  %v353_v29 = vld [vmem:[%s1266_s9 + $0xe8] sm:$0xff] }
  0x2f   :  { %247 = vmatpush.msrb.mxu2 %v198_v50  ;;  %267 = vmatpush.msrb.mxu3 %v230_v51  ;;  %v338_v28 = vld [vmem:[%s1266_s9 + $0x70] sm:$0xff]  ;;  %v337_v30 = vld [vmem:[%s1266_s9 + $0x68] sm:$0xff]  ;;  %v352_v31 = vld [vmem:[%s1266_s9 + $0xe0] sm:$0xff] }
  0x30   :  { %296 = vmatpush.msra.mxu0 %v181_v60  ;;  %315 = vmatpush.msra.mxu1 %v215_v61  ;;  %v336_v32 = vld [vmem:[%s1266_s9 + $0x60] sm:$0xff]  ;;  %v351_v33 = vld [vmem:[%s1266_s9 + $0xd8] sm:$0xff]  ;;  %v350_v35 = vld [vmem:[%s1266_s9 + $0xd0] sm:$0xff] }
  0x31   :  { %248 = vmatpush.msrb.mxu2 %v196_v54  ;;  %268 = vmatpush.msrb.mxu3 %v228_v55  ;;  %v335_v34 = vld [vmem:[%s1266_s9 + $0x58] sm:$0xff]  ;;  %v334_v36 = vld [vmem:[%s1266_s9 + $0x50] sm:$0xff]  ;;  %v349_v37 = vld [vmem:[%s1266_s9 + $0xc8] sm:$0xff] }
  0x32   :  { %297 = vmatpush.msra.mxu0 %v179_v13  ;;  %316 = vmatpush.msra.mxu1 %v213_v14  ;;  %v333_v38 = vld [vmem:[%s1266_s9 + $0x48] sm:$0xff]  ;;  %v93_v39 = vld [vmem:[%s1262_s5] sm:$0x3]  ;;  %v347_v43 = vld [vmem:[%s1266_s9 + $0xb8] sm:$0xff] }
  0x33   :  { %249 = vmatpush.msrb.mxu2 %v194_v58  ;;  %269 = vmatpush.msrb.mxu3 %v226_v59  ;;  %v348_v41 = vld [vmem:[%s1266_s9 + $0xc0] sm:$0xff]  ;;  %v95_v44 = vmul.f32 %v94_v40, %v93_v39  ;;  %v331_v45 = vld [vmem:[%s1266_s9 + $0x38] sm:$0xff]  ;;  %v346_v47 = vld [vmem:[%s1266_s9 + $0xb0] sm:$0xff] }
  0x34   :  { %298 = vmatpush.msra.mxu0 %v177_v17  ;;  %317 = vmatpush.msra.mxu1 %v211_v18  ;;  %v332_v42 = vld [vmem:[%s1266_s9 + $0x40] sm:$0xff]  ;;  %v330_v48 = vld [vmem:[%s1266_s9 + $0x30] sm:$0xff]  ;;  %v345_v49 = vld [vmem:[%s1266_s9 + $0xa8] sm:$0xff] }
  0x35   :  { %250 = vmatpush.msrb.mxu2 %v192_v62  ;;  %270 = vmatpush.msrb.mxu3 %v224_v63  ;;  %v96_v46 = vld [vmem:[%s1263_s6] sm:$0x3]  ;;  %v343_v52 = vld [vmem:[%s1266_s9 + $0x98] sm:$0xff]  ;;  %v329_v61 = vld [vmem:[%s1266_s9 + $0x28] sm:$0xff] }
  0x36   :  { %299 = vmatpush.msra.mxu0 %v175_v21  ;;  %318 = vmatpush.msra.mxu1 %v209_v22  ;;  %v97_v50 = vadd.f32 %v96_v46, %v95_v44  ;;  %v344_v51 = vld [vmem:[%s1266_s9 + $0xa0] sm:$0xff]  ;;  %v342_v62 = vld [vmem:[%s1266_s9 + $0x90] sm:$0xff]  ;;  %v413_v18 = vld [vmem:[%s1268_s11 + $0x18] sm:$0xff] }
  0x37   :  { %251 = vmatpush.msrb.mxu2 %v190_v0  ;;  %271 = vmatpush.msrb.mxu3 %v222_v1  ;;  %v328_v63 = vld [vmem:[%s1266_s9 + $0x20] sm:$0xff]  ;;  %v341_v0 = vld [vmem:[%s1266_s9 + $0x88] sm:$0xff]  ;;  %v327_v1 = vld [vmem:[%s1266_s9 + $0x18] sm:$0xff] }
  0x38   :  { %319 = vmatpush.msra.mxu1 %v207_v24  ;;  %v124_v53 = vperm.slane %v97_v50, 0  ;;  %v125_v54 = vperm.slane %v97_v50, 1  ;;  %v412_v17 = vld [vmem:[%s1268_s11 + $0x10] sm:$0xff]  ;;  %v490_v44 = vld [vmem:[%s1270_s13 + $0xc0] sm:$0xff]  ;;  %v489_v46 = vld [vmem:[%s1270_s13 + $0xb8] sm:$0xff] }
  0x39   :  { %252 = vmatpush.msrb.mxu2 %v188_v2  ;;  %272 = vmatpush.msrb.mxu3 %v220_v3  ;;  %v340_v2 = vld [vmem:[%s1266_s9 + $0x80] sm:$0xff]  ;;  %v326_v3 = vld [vmem:[%s1266_s9 + $0x10] sm:$0xff]  ;;  %v487_v50 = vld [vmem:[%s1270_s13 + $0xa8] sm:$0xff] }
  0x3a   :  { %438 = vmatpush.msrb.mxu0 %v412_v17  ;;  %458 = vmatpush.msrb.mxu1 %v413_v18  ;;  %v476_v39 = vld [vmem:[%s1270_s13 + $0x50] sm:$0xff] }
  0x3b   :  { %253 = vmatpush.msrb.mxu2 %v186_v4  ;;  %273 = vmatpush.msrb.mxu3 %v218_v5  ;;  %v325_v4 = vld [vmem:[%s1266_s9 + $0x8] sm:$0xff]  ;;  %v324_v5 = vld [vmem:[%s1266_s9] sm:$0xff]  ;;  %v492_v40 = vld [vmem:[%s1270_s13 + $0xd0] sm:$0xff] }
  0x3d   :  { %254 = vmatpush.msrb.mxu2 %v184_v6  ;;  %274 = vmatpush.msrb.mxu3 %v216_v7  ;;  %v238_v6 = vld [vmem:[%s1265_s8] sm:$0x3]  ;;  %s670_s8 = smov 112  }
  0x3e   :  { %v241_v7 = vperm.slane %v238_v6, 1 }
  0x3f   :  { %255 = vmatpush.msrb.mxu2 %v182_v8  ;;  %275 = vmatpush.msrb.mxu3 %v214_v9 }
  0x41   :  { %256 = vmatpush.msrb.mxu2 %v180_v10  ;;  %276 = vmatpush.msrb.mxu3 %v212_v12  ;;  %v240_v12 = vperm.slane %v238_v6, 0 }
  0x43   :  { %257 = vmatpush.msrb.mxu2 %v178_v11  ;;  %277 = vmatpush.msrb.mxu3 %v210_v16 }
  0x45   :  { %258 = vmatpush.msrb.mxu2 %v176_v15  ;;  %278 = vmatpush.msrb.mxu3 %v208_v20 }
  0x47   :  { %259 = vmatpush.msrb.mxu2 %v174_v19  ;;  %279 = vmatpush.msrb.mxu3 %v206_v23  ;;  %v591_v19 = vld [vmem:[#allocation5] ss:$0 sm:$0xff] }
  0x49   :  { %380 = vmatpush.msra.mxu3 %v355_v25  ;;  %360 = vmatpush.msra.mxu2 %v339_v27  ;;  %v410_v27 = vld [vmem:[%s1268_s11] sm:$0xff] }
  0x4a   :  { %439 = vmatpush.msrb.mxu0 %v410_v27 }
  0x4b   :  { %381 = vmatpush.msra.mxu3 %v354_v26  ;;  %361 = vmatpush.msra.mxu2 %v338_v28  ;;  %v411_v28 = vld [vmem:[%s1268_s11 + $0x8] sm:$0xff] }
  0x4c   :  { %459 = vmatpush.msrb.mxu1 %v411_v28 }
  0x4d   :  { %382 = vmatpush.msra.mxu3 %v353_v29  ;;  %362 = vmatpush.msra.mxu2 %v337_v30  ;;  %v481_v29 = vld [vmem:[%s1270_s13 + $0x78] sm:$0xff] }
  0x4e   :  { %v497_v30 = vld [vmem:[%s1270_s13 + $0xf8] sm:$0xff] }
  0x4f   :  { %383 = vmatpush.msra.mxu3 %v352_v31  ;;  %363 = vmatpush.msra.mxu2 %v336_v32  ;;  %v480_v31 = vld [vmem:[%s1270_s13 + $0x70] sm:$0xff] }
  0x50   :  { %v496_v32 = vld [vmem:[%s1270_s13 + $0xf0] sm:$0xff] }
  0x51   :  { %384 = vmatpush.msra.mxu3 %v351_v33  ;;  %364 = vmatpush.msra.mxu2 %v335_v34  ;;  %v479_v33 = vld [vmem:[%s1270_s13 + $0x68] sm:$0xff] }
  0x52   :  { %v495_v34 = vld [vmem:[%s1270_s13 + $0xe8] sm:$0xff] }
  0x53   :  { %385 = vmatpush.msra.mxu3 %v350_v35  ;;  %365 = vmatpush.msra.mxu2 %v334_v36  ;;  %v478_v35 = vld [vmem:[%s1270_s13 + $0x60] sm:$0xff] }
  0x54   :  { %v494_v36 = vld [vmem:[%s1270_s13 + $0xe0] sm:$0xff] }
  0x55   :  { %386 = vmatpush.msra.mxu3 %v349_v37  ;;  %366 = vmatpush.msra.mxu2 %v333_v38  ;;  %v477_v37 = vld [vmem:[%s1270_s13 + $0x58] sm:$0xff] }
  0x56   :  { %v493_v38 = vld [vmem:[%s1270_s13 + $0xd8] sm:$0xff] }
  0x57   :  { %387 = vmatpush.msra.mxu3 %v348_v41  ;;  %367 = vmatpush.msra.mxu2 %v332_v42  ;;  %v475_v41 = vld [vmem:[%s1270_s13 + $0x48] sm:$0xff] }
  0x58   :  { %v491_v42 = vld [vmem:[%s1270_s13 + $0xc8] sm:$0xff] }
  0x59   :  { %388 = vmatpush.msra.mxu3 %v347_v43  ;;  %368 = vmatpush.msra.mxu2 %v331_v45  ;;  %v474_v43 = vld [vmem:[%s1270_s13 + $0x40] sm:$0xff]  ;;  %v473_v45 = vld [vmem:[%s1270_s13 + $0x38] sm:$0xff] }
  0x5b   :  { %389 = vmatpush.msra.mxu3 %v346_v47  ;;  %369 = vmatpush.msra.mxu2 %v330_v48  ;;  %v472_v47 = vld [vmem:[%s1270_s13 + $0x30] sm:$0xff] }
  0x5c   :  { %v488_v48 = vld [vmem:[%s1270_s13 + $0xb0] sm:$0xff] }
  0x5d   :  { %390 = vmatpush.msra.mxu3 %v345_v49  ;;  %370 = vmatpush.msra.mxu2 %v329_v61  ;;  %v471_v49 = vld [vmem:[%s1270_s13 + $0x28] sm:$0xff] }
  0x5e   :  { %v467_v61 = vld [vmem:[%s1270_s13 + $0x8] sm:$0xff] }
  0x5f   :  { %391 = vmatpush.msra.mxu3 %v344_v51  ;;  %371 = vmatpush.msra.mxu2 %v328_v63  ;;  %v470_v51 = vld [vmem:[%s1270_s13 + $0x20] sm:$0xff] }
  0x60   :  { %v466_v63 = vld [vmem:[%s1270_s13] sm:$0xff] }
  0x61   :  { %392 = vmatpush.msra.mxu3 %v343_v52  ;;  %372 = vmatpush.msra.mxu2 %v327_v1  ;;  %v486_v52 = vld [vmem:[%s1270_s13 + $0xa0] sm:$0xff] }
  0x62   :  { %v414_v1 = vld [vmem:[%s1269_s12] sm:$0x3]  ;;  %s580_s12 = sld [smem:[#allocation2 + $0x1]] }
  0x63   :  { %393 = vmatpush.msra.mxu3 %v342_v62  ;;  %373 = vmatpush.msra.mxu2 %v326_v3  ;;  %v483_v62 = vld [vmem:[%s1270_s13 + $0x88] sm:$0xff]  ;;  %v417_v3 = vperm.slane %v414_v1, 1 }
  0x65   :  { %394 = vmatpush.msra.mxu3 %v341_v0  ;;  %374 = vmatpush.msra.mxu2 %v325_v4  ;;  %v482_v0 = vld [vmem:[%s1270_s13 + $0x80] sm:$0xff] }
  0x67   :  { %395 = vmatpush.msra.mxu3 %v340_v2  ;;  %375 = vmatpush.msra.mxu2 %v324_v5  ;;  %v416_v2 = vperm.slane %v414_v1, 0 }
  0x68   :  { %v563_v28 = vstv %s580_s12 }
  0xab   :  { %v149_v55 = vpop.f32.mrf.mxu2  ;;  %v169_v56 = vpop.f32.mrf.mxu3 }
  0xac   :  { %v150_v57 = vadd.f32 %v149_v55, %v124_v53  ;;  %v170_v58 = vadd.f32 %v169_v56, %v125_v54  ;;  %v469_v53 = vld [vmem:[%s1270_s13 + $0x18] sm:$0xff]  ;;  %v400_v55 = vld [vmem:[%s1259_s2] sm:$0x3] }
  0xad   :  { %v485_v54 = vld [vmem:[%s1270_s13 + $0x98] sm:$0xff] }
  0xae   :  { %v172_v59 = vmax.f32 %v150_v57, 0.0  ;;  %v173_v60 = vmax.f32 %v170_v58, 0.0 }
  0xb0   :  { %260 = vmatmul.f32.vlgmr.msrb.gmra.mxu2 %v172_v59  ;;  %300 = vmatmul.f32.vlgmr.msra.gmra.mxu0 %v172_v59  ;;  %v468_v59 = vld [vmem:[%s1270_s13 + $0x10] sm:$0xff] }
  0xb1   :  { %280 = vmatmul.f32.vlgmr.msrb.gmra.mxu3 %v173_v60  ;;  %320 = vmatmul.f32.vlgmr.msra.gmra.mxu1 %v173_v60  ;;  %v484_v60 = vld [vmem:[%s1270_s13 + $0x90] sm:$0xff] }
  0xb2   :  { %502 = vmatpush.msra.mxu0 %v481_v29  ;;  %522 = vmatpush.msra.mxu1 %v497_v30 }
  0xb4   :  { %503 = vmatpush.msra.mxu0 %v480_v31  ;;  %523 = vmatpush.msra.mxu1 %v496_v32 }
  0xb6   :  { %504 = vmatpush.msra.mxu0 %v479_v33  ;;  %524 = vmatpush.msra.mxu1 %v495_v34  ;;  %v671_v33 = vmov 0.0  }
  0xb8   :  { %505 = vmatpush.msra.mxu0 %v478_v35  ;;  %525 = vmatpush.msra.mxu1 %v494_v36 }
  0xba   :  { %506 = vmatpush.msra.mxu0 %v477_v37  ;;  %526 = vmatpush.msra.mxu1 %v493_v38 }
  0xbc   :  { %507 = vmatpush.msra.mxu0 %v476_v39  ;;  %527 = vmatpush.msra.mxu1 %v492_v40 }
  0xbe   :  { %508 = vmatpush.msra.mxu0 %v475_v41  ;;  %528 = vmatpush.msra.mxu1 %v491_v42 }
  0xc0   :  { %509 = vmatpush.msra.mxu0 %v474_v43  ;;  %529 = vmatpush.msra.mxu1 %v490_v44 }
  0xc2   :  { %510 = vmatpush.msra.mxu0 %v473_v45  ;;  %530 = vmatpush.msra.mxu1 %v489_v46 }
  0xc4   :  { %511 = vmatpush.msra.mxu0 %v472_v47  ;;  %531 = vmatpush.msra.mxu1 %v488_v48 }
  0xc6   :  { %512 = vmatpush.msra.mxu0 %v471_v49  ;;  %532 = vmatpush.msra.mxu1 %v487_v50 }
  0xc8   :  { %513 = vmatpush.msra.mxu0 %v470_v51  ;;  %533 = vmatpush.msra.mxu1 %v486_v52 }
  0xca   :  { %514 = vmatpush.msra.mxu0 %v469_v53  ;;  %534 = vmatpush.msra.mxu1 %v485_v54 }
  0xcc   :  { %515 = vmatpush.msra.mxu0 %v468_v59  ;;  %535 = vmatpush.msra.mxu1 %v484_v60 }
  0xce   :  { %516 = vmatpush.msra.mxu0 %v467_v61  ;;  %536 = vmatpush.msra.mxu1 %v483_v62 }
  0xd0   :  { %517 = vmatpush.msra.mxu0 %v466_v63  ;;  %537 = vmatpush.msra.mxu1 %v482_v0 }
 0x12d   :  { %v301_v8 = vpop.f32.mrf.mxu0 }
 0x12e   :  { %v302_v9 = vadd.f32 %v301_v8, %v241_v7  ;;  %v321_v10 = vpop.f32.mrf.mxu1 }
 0x130   :  { %v322_v11 = vadd.f32 %v321_v10, %v302_v9  ;;  %v592_v10 = vld [vmem:[#allocation6] ss:$0 sm:$0xff] }
 0x132   :  { %396 = vmatmul.f32.vlgmr.msra.gmra.mxu3 %v322_v11 }
 0x133   :  { %v261_v13 = vpop.f32.mrf.mxu2 }
 0x134   :  { %v262_v14 = vadd.f32 %v261_v13, %v240_v12  ;;  %v281_v15 = vpop.f32.mrf.mxu3 }
 0x136   :  { %v282_v16 = vadd.f32 %v281_v15, %v262_v14 }
 0x138   :  { %376 = vmatmul.f32.vlgmr.msra.gmra.mxu2 %v282_v16 }
 0x1b5   :  { %v397_v22 = vpop.f32.mrf.mxu3 }
 0x1bb   :  { %v377_v20 = vpop.f32.mrf.mxu2 }
 0x1bc   :  { %v378_v21 = vadd.f32 %v591_v19, %v377_v20 }
 0x1be   :  { %v1139_v23 = vadd.f32 %v397_v22, %v378_v21 }
 0x1c0   :  { %v401_v24 = vmul.f32 0.5, %v1139_v23 }
 0x1c2   :  { %v402_v25 = vmul.f32 1.442695, %v401_v24  ;;  %v566_v24 = vld [vmem:[%s1260_s3] sm:$0x3] }
 0x1c3   :  { %vm568_vm5 = vcmp.eq.s32.totalorder %v566_v24, 1  ;;  %vm567_vm7 = vcmp.eq.s32.totalorder %v566_v24, 0 }
 0x1c4   :  { %593 = vpow2.f32 %v402_v25 }
 0x1ca   :  { %v594_v26 = vpop.eup %593 }
 0x1cb   :  { %405 = vrot.lane.b32.xlu0 %v594_v26, %s670_s8 }
 0x23d   :  { %v406_v56 = vpop.permute.xlu0 %405 }
 0x23e   :  { %v408_v57 = vmul.f32 %v406_v56, %v400_v55 }
 0x240   :  { %v409_v58 = vadd.f32 %v408_v57, %v1139_v23 }
 0x242   :  { %583 = vmatmul.msk.f32.vlgmr.msrb.gmra.mxu0 %vm420_vm1, %v409_v58  ;;  %584 = vmatmul.msk.f32.vlgmr.msrb.gmra.mxu1 %vm420_vm1, %v409_v58 }
 0x2bf   :  { %v441_v4 = vpop.f32.mrf.mxu0  ;;  %v461_v5 = vpop.f32.mrf.mxu1 }
 0x2c0   :  { %v442_v6 = vadd.f32 %v441_v4, %v416_v2  ;;  %v462_v7 = vadd.f32 %v461_v5, %v417_v3 }
 0x2c2   :  { %v464_v8 = vmax.f32 %v442_v6, 0.0  ;;  %v465_v9 = vmax.f32 %v462_v7, 0.0 }
 0x2c4   :  { %518 = vmatmul.f32.vlgmr.msra.gmra.mxu0 %v464_v8  ;;  %538 = vmatmul.f32.vlgmr.msra.gmra.mxu1 %v465_v9 }
 0x341   :  { %v519_v11 = vpop.f32.mrf.mxu0  ;;  %v539_v13 = vpop.f32.mrf.mxu1 }
 0x342   :  { %v520_v12 = vadd.f32 %v592_v10, %v519_v11 }
 0x344   :  { %v540_v14 = vadd.f32 %v539_v13, %v520_v12 }
 0x346   :  { %v585_v15 = vmul.f32 -1.442695, %v540_v14 }
 0x348   :  { %595 = vpow2.f32 %v585_v15 }
 0x34e   :  { %v596_v16 = vpop.eup %595 }
 0x34f   :  { %v545_v17 = vadd.f32 1.0, %v596_v16 }
 0x351   :  { %597 = vrcp.f32 %v545_v17  ;;  %v557_v21 = vand.u32 2147483648, %v545_v17  ;;  %v555_v23 = vand.u32 2147483647, %v545_v17  ;;  %vm551_vm3 = vweird.f32 %v545_v17 }
 0x352   :  { %599 = vtanh.f32 %v540_v14 }
 0x353   :  { %v558_v27 = vor.u32 1.1754944e-38, %v557_v21  ;;  %vm556_vm6 = vcmp.eq.f32.partialorder %v555_v23, 8.507059e+37 }
 0x357   :  { %v598_v18 = vpop.eup %597 }
 0x358   :  { %v547_v19 = vmul.f32 %v598_v18, %v545_v17  ;;  %vm552_vm2 = vweird.f32 %v598_v18  ;;  %v600_v25 = vpop.eup %599 }
 0x359   :  { %vm553_vm4 = vmor %vm551_vm3, %vm552_vm2  ;;  %v562_v30 = vmul.f32 0.5, %v600_v25 }
 0x35a   :  { %v548_v20 = vsub.f32 1.0, %v547_v19 }
 0x35c   :  { %v549_v22 = vmul.f32 %v598_v18, %v548_v20 }
 0x35e   :  { %v550_v26 = vadd.f32 %v598_v18, %v549_v22 }
 0x360   :  { %v554_v29 = vsel %vm553_vm4, %v598_v18, %v550_v26 }
 0x361   :  { %v559_v31 = vsel %vm556_vm6, %v558_v27, %v554_v29 }
 0x362   :  { %vm564_vm8 = vcmp.gt.f32.partialorder %v559_v31, %v563_v28  ;;  %v569_v32 = vsel %vm568_vm5, %v559_v31, %v562_v30 }
 0x363   :  { %v565_v34 = vsel %vm564_vm8, 1.0, %v671_v33 }
 0x364   :  { %v570_v35 = vsel %vm567_vm7, %v565_v34, %v569_v32 }
 0x365   :  { %572 = vst.msk [vmem:[%s1272_s15] sm:$0x3] %vm571_vm9, %v570_v35 }
 0x366   :  { %577 = vsyncpa [#allocation3], 1 }
 0x367   :  { %578 = vsyncpa [#allocation7], 1 }
 0x368   :  { %579 = vsyncpa [#allocation4], 1 }

</bundles_post_ra>
